<compile_context>
chip_gen: v7x
topology: tpu7x:2x2x1
jax: 0.10.0
libtpu: 0.0.40
codegen_flags: <defaults>
</compile_context>

<pallas_src>
import functools

import jax
import jax.numpy as jnp
from jax.experimental import pallas as pl
from jax.experimental.pallas import tpu as pltpu


def _wbce_kernel(pos_ref, neg_ref, out_ref, *, temperature):
    # pos_ref: (TB, TN)      -- batch on sublanes, n on lanes
    # neg_ref: (TB, K, TN)   -- K (num_negs) on sublanes, n on lanes
    # out_ref: (TB, TN) f32
    pos = pos_ref[...].astype(jnp.float32)            # cast in-kernel, not in wrapper
    neg = neg_ref[...].astype(jnp.float32)
    k = neg.shape[1]

    # logsigmoid(x) = min(x, 0) - log1p(exp(-|x|))   (numerically stable)
    pos_part = jnp.minimum(pos, 0.0) - jnp.log1p(jnp.exp(-jnp.abs(pos)))

    # Softmax over K (sublane axis), fused with the mean's 1/K:
    #   mean_K(softplus(neg) * softmax(neg/T)) = sum_K(sp * e) / (K * sum_K(e))
    z = neg * (1.0 / temperature)
    z_max = jnp.max(z, axis=1, keepdims=True)          # (TB, 1, TN) -- XLU sublane reduce
    e = jnp.exp(z - z_max)                             # (TB, K, TN)

    # softplus(x) = max(x, 0) + log1p(exp(-|x|))     (numerically stable)
    sp = jnp.maximum(neg, 0.0) + jnp.log1p(jnp.exp(-jnp.abs(neg)))

    s = jnp.sum(sp * e, axis=1)                        # (TB, TN)
    d = jnp.sum(e, axis=1)                             # (TB, TN)
    neg_part = s * pl.reciprocal(d * float(k), approx=True)   # EUP vrcp, frees VALU

    out_ref[...] = -pos_part + neg_part


# Keep one neg block (in f32 terms) comfortably small: intermediates (z, e, sp,
# products) are a few live (TB, K, TN) f32 arrays plus double-buffered inputs,
# all of which must sit well under the scoped-VMEM default (32 MiB on v6e).
_NEG_BLOCK_BUDGET_BYTES = 1 << 20  # 1 MiB per neg block (f32)


def _pick_lane_tile(n, k):
    """Largest lane-dense tile along n (multiple of 128) dividing n, within budget."""
    if n % 128 == 0:
        for cand in (2048, 1024, 512, 256, 128):
            if n % cand == 0 and k * cand * 4 <= _NEG_BLOCK_BUDGET_BYTES:
                return cand
        return 128
    return n  # small / unaligned n: take the full dim as a single block


def _pick_batch_tile(b, k, tn):
    """Batch rows per block (sublane density for pos/out, fewer grid steps)."""
    for cand in (8, 4, 2, 1):
        if b % cand == 0 and cand * k * tn * 4 <= _NEG_BLOCK_BUDGET_BYTES:
            return cand
    return 1


def weighted_bce_loss(pos_scores, neg_scores, temperature):
    """pos_scores: (b, n, l) with l == 1; neg_scores: (b, n, num_negs)."""
    b, n, l = pos_scores.shape
    assert l == 1, "PyTorch broadcast of -pos_part + neg_part requires l == 1"
    _, _, k = neg_scores.shape

    # Keep the native dtype (bf16 stays bf16) -> half the HBM traffic vs a
    # wrapper-side f32 cast; the kernel promotes to f32 internally.
    pos2d = pos_scores.reshape(b, n)                   # rearrange b n 1 -> b n
    # Put the reduction axis K on sublanes and n on lanes (lane-dense compute,
    # XLU sublane reduces, lane-dense output stores).
    neg_t = jnp.swapaxes(neg_scores, 1, 2)             # (b, K, n)

    tn = _pick_lane_tile(n, k)
    tb = _pick_batch_tile(b, k, tn)
    grid = (b // tb, n // tn)

    kernel = functools.partial(_wbce_kernel, temperature=float(temperature))

    return pl.pallas_call(
        kernel,
        out_shape=jax.ShapeDtypeStruct((b, n), jnp.float32),
        grid_spec=pltpu.PrefetchScalarGridSpec(
            num_scalar_prefetch=0,
            grid=grid,
            in_specs=[
                pl.BlockSpec((tb, tn), lambda i, j: (i, j)),
                pl.BlockSpec((tb, k, tn), lambda i, j: (i, 0, j)),
            ],
            out_specs=pl.BlockSpec((tb, tn), lambda i, j: (i, j)),
        ),
        compiler_params=pltpu.CompilerParams(
            dimension_semantics=("parallel", "parallel"),
        ),
    )(pos2d, neg_t)


def _reference(pos_scores, neg_scores, temperature):
    b, n, l = pos_scores.shape
    pos2d = pos_scores.reshape(b, n * l)
    pos_part = jax.nn.log_sigmoid(pos2d)
    weight = jax.nn.softmax(neg_scores / temperature, axis=-1)
    neg_part = jnp.mean(jax.nn.softplus(neg_scores) * weight, axis=-1)
    return -pos_part + neg_part


if __name__ == "__main__":
    key = jax.random.PRNGKey(0)
    k1, k2 = jax.random.split(key)

    b, n, l, num_negs = 2, 8, 1, 16
    temperature = 0.5

    pos_scores = jax.random.normal(k1, (b, n, l), dtype=jnp.float32)
    neg_scores = jax.random.normal(k2, (b, n, num_negs), dtype=jnp.float32)

    loss = weighted_bce_loss(pos_scores, neg_scores, temperature)
    loss = jax.block_until_ready(loss)

    ref = _reference(pos_scores, neg_scores, temperature)
    # approx=True reciprocal introduces ~1e-3-level relative error (fine for a loss).
    if not jnp.allclose(loss, ref, atol=2e-3, rtol=2e-3):
        raise AssertionError(f"mismatch: max err {jnp.max(jnp.abs(loss - ref))}")

    print("KERNEL_OK")
</pallas_src>

<mosaic_0001>
module attributes {stable_mosaic.version = 11 : i64} {
  func.func @_wbce_kernel(%arg0: i32, %arg1: i32, %arg2: memref<2x8xf32, #tpu.memory_space<vmem>>, %arg3: memref<2x16x8xf32, #tpu.memory_space<vmem>>, %arg4: memref<2x8xf32, #tpu.memory_space<vmem>>) attributes {dimension_semantics = [#tpu.dimension_semantics<parallel>, #tpu.dimension_semantics<parallel>], iteration_bounds = array<i64: 1, 1>, scalar_prefetch = 0 : i64, scratch_operands = 0 : i64, tpu.core_type = #tpu.core_type<tc>, window_params = [{transform_indices = @transform_0, window_bounds = array<i64: 2, 8>}, {transform_indices = @transform_1, window_bounds = array<i64: 2, 16, 8>}, {transform_indices = @transform_2, window_bounds = array<i64: 2, 8>}]} {
    %c0 = arith.constant 0 : index
    %c0_0 = arith.constant 0 : index
    %0 = vector.load %arg2[%c0, %c0_0] : memref<2x8xf32, #tpu.memory_space<vmem>>, vector<2x8xf32>
    %c0_1 = arith.constant 0 : index
    %c0_2 = arith.constant 0 : index
    %c0_3 = arith.constant 0 : index
    %1 = vector.load %arg3[%c0_1, %c0_2, %c0_3] : memref<2x16x8xf32, #tpu.memory_space<vmem>>, vector<2x16x8xf32>
    %cst = arith.constant 0.000000e+00 : f32
    %2 = vector.broadcast %cst : f32 to vector<2x8xf32>
    %3 = arith.minimumf %0, %2 : vector<2x8xf32>
    %4 = math.absf %0 : vector<2x8xf32>
    %cst_4 = arith.constant 0.000000e+00 : f32
    %5 = vector.broadcast %cst_4 : f32 to vector<2x8xf32>
    %6 = arith.subf %5, %4 : vector<2x8xf32>
    %7 = math.exp %6 : vector<2x8xf32>
    %8 = math.log1p %7 : vector<2x8xf32>
    %9 = arith.subf %3, %8 : vector<2x8xf32>
    %cst_5 = arith.constant 2.000000e+00 : f32
    %10 = vector.broadcast %cst_5 : f32 to vector<2x16x8xf32>
    %11 = arith.mulf %1, %10 : vector<2x16x8xf32>
    %cst_6 = arith.constant dense<0xFF800000> : vector<2x8xf32>
    %12 = vector.multi_reduction <maximumf>, %11, %cst_6 [1] : vector<2x16x8xf32> to vector<2x8xf32>
    %13 = vector.shape_cast %12 : vector<2x8xf32> to vector<2x1x8xf32>
    %14 = vector.broadcast %13 : vector<2x1x8xf32> to vector<2x16x8xf32>
    %15 = arith.subf %11, %14 : vector<2x16x8xf32>
    %16 = math.exp %15 : vector<2x16x8xf32>
    %cst_7 = arith.constant 0.000000e+00 : f32
    %17 = vector.broadcast %cst_7 : f32 to vector<2x16x8xf32>
    %18 = arith.maximumf %1, %17 : vector<2x16x8xf32>
    %19 = math.absf %1 : vector<2x16x8xf32>
    %cst_8 = arith.constant 0.000000e+00 : f32
    %20 = vector.broadcast %cst_8 : f32 to vector<2x16x8xf32>
    %21 = arith.subf %20, %19 : vector<2x16x8xf32>
    %22 = math.exp %21 : vector<2x16x8xf32>
    %23 = math.log1p %22 : vector<2x16x8xf32>
    %24 = arith.addf %18, %23 : vector<2x16x8xf32>
    %25 = arith.mulf %24, %16 : vector<2x16x8xf32>
    %cst_9 = arith.constant dense<0.000000e+00> : vector<2x8xf32>
    %26 = vector.multi_reduction <add>, %25, %cst_9 [1] : vector<2x16x8xf32> to vector<2x8xf32>
    %cst_10 = arith.constant dense<0.000000e+00> : vector<2x8xf32>
    %27 = vector.multi_reduction <add>, %16, %cst_10 [1] : vector<2x16x8xf32> to vector<2x8xf32>
    %cst_11 = arith.constant 1.600000e+01 : f32
    %28 = vector.broadcast %cst_11 : f32 to vector<2x8xf32>
    %29 = arith.mulf %27, %28 : vector<2x8xf32>
    %30 = tpu.reciprocal %29 {approx = true} : vector<2x8xf32> -> vector<2x8xf32>
    %31 = arith.mulf %26, %30 : vector<2x8xf32>
    %cst_12 = arith.constant 0.000000e+00 : f32
    %32 = vector.broadcast %cst_12 : f32 to vector<2x8xf32>
    %33 = arith.subf %32, %9 : vector<2x8xf32>
    %34 = arith.addf %33, %31 : vector<2x8xf32>
    %c0_13 = arith.constant 0 : index
    %c0_14 = arith.constant 0 : index
    %35 = vector.load %arg4[%c0_13, %c0_14] : memref<2x8xf32, #tpu.memory_space<vmem>>, vector<2x8xf32>
    tpu.vector_store %arg4[%c0_13, %c0_14], %34 {strides = array<i32>} : memref<2x8xf32, #tpu.memory_space<vmem>>, vector<2x8xf32>,
    return
  }
  func.func @transform_0(%arg0: i32, %arg1: i32) -> (i32, i32) {
    %c0_i32 = arith.constant 0 : i32
    return %arg0, %arg1 : i32, i32
  }
  func.func @transform_1(%arg0: i32, %arg1: i32) -> (i32, i32, i32) {
    %c0_i32 = arith.constant 0 : i32
    %c0_i32_0 = arith.constant 0 : i32
    return %arg0, %c0_i32, %arg1 : i32, i32, i32
  }
  func.func @transform_2(%arg0: i32, %arg1: i32) -> (i32, i32) {
    %c0_i32 = arith.constant 0 : i32
    return %arg0, %arg1 : i32, i32
  }
}

</mosaic_0001>

<bundles_post_ra>
// kernel: tpu_custom_call.1
= control target key start
LH: loop header
LB: loop body
LE: loop exit
PB: predicated region body
PF: predicated region fallthrough
CT: control target
= control target key end

     0   :  { %7 = vsyncpa [#allocation3], 0  ;;  %vm36_vm0 = vcmask 64512   ;;  %vm176_vm6 = vcmask 1041409   ;;  %vm180_vm7 = vcmask 58368   ;;  %s362_s0 = inlined_call_operand.vmem [shape: f32[2,8], index: 0, kind: input, shape index: {}]   ;;  %s363_s1 = inlined_call_operand.vmem [shape: f32[2,16,8], index: 1, kind: input, shape index: {}]   ;;  %s364_s2 = inlined_call_operand.hbm [shape: f32[2,8], index: 2, kind: output, shape index: {}]  }
   0x1   :  { %v272_v0 = vld [vmem:[%s363_s1] sm:$0xff]  ;;  %v277_v1 = vld [vmem:[%s363_s1 + $0x8] sm:$0xff]  ;;  %v282_v2 = vld [vmem:[%s363_s1 + $0x10] sm:$0xff] }
   0x2   :  { %v287_v3 = vld [vmem:[%s363_s1 + $0x18] sm:$0xff]  ;;  %v292_v4 = vld [vmem:[%s362_s0] sm:$0x3]  ;;  %v32_v5 = vmul.f32 2.0, %v272_v0  ;;  %v33_v6 = vmul.f32 2.0, %v277_v1  ;;  %v34_v7 = vmul.f32 2.0, %v282_v2 }
   0x3   :  { %v35_v8 = vmul.f32 2.0, %v287_v3  ;;  %v18_v13 = vand.u32 2147483647, %v292_v4  ;;  %v71_v16 = vand.u32 2147483647, %v272_v0  ;;  %s253_s0 = smov [#allocation2]  }
   0x4   :  { %v37_v9 = vsel %vm36_vm0, %v32_v5, -inf  ;;  %v38_v10 = vsel %vm36_vm0, %v33_v6, -inf  ;;  %v46_v11 = vsel %vm36_vm0, %v34_v7, -inf  ;;  %v72_v17 = vand.u32 2147483647, %v277_v1  ;;  %s188_s1 = sshll.u32 %s253_s0, 4  ;;  %s189_s1 = int_to_ptr.vmem [resolvable:$true] %s188_s1 }
   0x5   :  { %v47_v12 = vsel %vm36_vm0, %v35_v8, -inf  ;;  %v39_v14 = vmax.f32 %v37_v9, %v38_v10  ;;  %v73_v18 = vand.u32 2147483647, %v282_v2  ;;  %v74_v21 = vand.u32 2147483647, %v287_v3  ;;  %s229_s19 = scalar_lea.vmem %s189_s1, 32  ;;  %p234_p1 = scmp.lt.s32.totalorder %s189_s1, %s189_s1 }
   0x6   :  { %v48_v15 = vmax.f32 %v46_v11, %v47_v12  ;;  %v75_v22 = vsub.f32 0.0, %v71_v16  ;;  %v76_v23 = vsub.f32 0.0, %v72_v17  ;;  %v19_v25 = vsub.f32 0.0, %v18_v13  ;;  %p230_p0 = scmp.ne.s32.totalorder %s189_s1, %s229_s19  ;;  %p235_p2 = scmp.lt.s32.totalorder %s229_s19, %s229_s19 }
   0x7   :  { %v40_v19 = vrot.slane %v39_v14, 4  ;;  %v77_v24 = vsub.f32 0.0, %v73_v18  ;;  %v78_v28 = vsub.f32 0.0, %v74_v21  ;;  %v69_v13 = vmax.f32 %v282_v2, 0.0 }
   0x8   :  { %v49_v20 = vrot.slane %v48_v15, 4  ;;  %v79_v29 = vmul.f32 1.442695, %v75_v22  ;;  %v81_v30 = vmul.f32 1.442695, %v76_v23  ;;  %p236_p3 = por %p235_p2, %p234_p1 }
   0x9   :  { %v41_v26 = vmax.f32 %v39_v14, %v40_v19  ;;  %v83_v31 = vmul.f32 1.442695, %v77_v24  ;;  %v85_v34 = vmul.f32 1.442695, %v78_v28  ;;  %v20_v37 = vmul.f32 1.442695, %v19_v25 }
   0xa   :  { %v50_v27 = vmax.f32 %v48_v15, %v49_v20  ;;  %197 = vpow2.f32 %v79_v29  ;;  %v70_v14 = vmax.f32 %v287_v3, 0.0  ;;  %p237_p4 = pnand %p236_p3, %p230_p0 }
   0xb   :  { %v42_v32 = vrot.slane %v41_v26, 2  ;;  %199 = vpow2.f32 %v81_v30 }
   0xc   :  { %v51_v33 = vrot.slane %v50_v27, 2  ;;  %201 = vpow2.f32 %v83_v31 }
   0xd   :  { %v43_v35 = vmax.f32 %v41_v26, %v42_v32  ;;  %203 = vpow2.f32 %v85_v34 }
   0xe   :  { %v52_v36 = vmax.f32 %v50_v27, %v51_v33  ;;  %205 = vpow2.f32 %v20_v37 }
   0xf   :  { %v44_v38 = vrot.slane %v43_v35, 1 }
  0x10   :  { %v53_v39 = vrot.slane %v52_v36, 1 }
  0x11   :  { %v45_v40 = vmax.f32 %v43_v35, %v44_v38 }
  0x12   :  { %v54_v41 = vmax.f32 %v52_v36, %v53_v39 }
  0x13   :  { %v55_v42 = vsub.f32 %v32_v5, %v45_v40  ;;  %v56_v43 = vsub.f32 %v33_v6, %v45_v40  ;;  %v67_v5 = vmax.f32 %v272_v0, 0.0 }
  0x14   :  { %v57_v44 = vsub.f32 %v34_v7, %v54_v41  ;;  %v58_v45 = vsub.f32 %v35_v8, %v54_v41  ;;  %v198_v49 = vpop.eup %197  ;;  %v68_v8 = vmax.f32 %v277_v1, 0.0 }
  0x15   :  { %v59_v46 = vmul.f32 1.442695, %v55_v42  ;;  %v61_v47 = vmul.f32 1.442695, %v56_v43  ;;  %v200_v51 = vpop.eup %199  ;;  %v87_v52 = vadd.f32 1.0, %v198_v49  ;;  %v90_v59 = vmul.f32 -0.5, %v198_v49 }
  0x16   :  { %v63_v48 = vmul.f32 1.442695, %v57_v44  ;;  %v65_v50 = vmul.f32 1.442695, %v58_v45  ;;  %v202_v53 = vpop.eup %201  ;;  %v96_v54 = vadd.f32 1.0, %v200_v51  ;;  %v99_v60 = vmul.f32 -0.5, %v200_v51 }
  0x17   :  { %207 = vpow2.f32 %v59_v46  ;;  %v204_v55 = vpop.eup %203  ;;  %v105_v56 = vadd.f32 1.0, %v202_v53  ;;  %v108_v61 = vmul.f32 -0.5, %v202_v53  ;;  %v91_v6 = vadd.f32 1.0, %v90_v59 }
  0x18   :  { %209 = vpow2.f32 %v61_v47  ;;  %v114_v57 = vadd.f32 1.0, %v204_v55  ;;  %v307_v58 = vpop.eup %205  ;;  %v117_v62 = vmul.f32 -0.5, %v204_v55  ;;  %v93_v9 = vand.u32 2147483647, %v198_v49 }
  0x19   :  { %211 = vpow2.f32 %v63_v48  ;;  %v22_v63 = vadd.f32 1.0, %v307_v58  ;;  %v100_v10 = vadd.f32 1.0, %v99_v60  ;;  %v102_v11 = vand.u32 2147483647, %v200_v51 }
  0x1a   :  { %213 = vpow2.f32 %v65_v50  ;;  %v109_v15 = vadd.f32 1.0, %v108_v61  ;;  %v111_v18 = vand.u32 2147483647, %v202_v53  ;;  %v118_v19 = vadd.f32 1.0, %v117_v62 }
  0x1b   :  { %215 = vlog2.f32 %v87_v52  ;;  %v120_v20 = vand.u32 2147483647, %v204_v55  ;;  %v92_v1 = vmul.f32 %v198_v49, %v91_v6  ;;  %vm317_vm1 = vcmp.lt.f32.partialorder %v93_v9, 0.0004427343 }
  0x1c   :  { %217 = vlog2.f32 %v96_v54  ;;  %v101_v3 = vmul.f32 %v200_v51, %v100_v10  ;;  %vm321_vm2 = vcmp.lt.f32.partialorder %v102_v11, 0.0004427343  ;;  %v110_v29 = vmul.f32 %v202_v53, %v109_v15 }
  0x1d   :  { %219 = vlog2.f32 %v105_v56  ;;  %vm326_vm3 = vcmp.lt.f32.partialorder %v111_v18, 0.0004427343  ;;  %v119_v35 = vmul.f32 %v204_v55, %v118_v19  ;;  %vm330_vm4 = vcmp.lt.f32.partialorder %v120_v20, 0.0004427343 }
  0x1e   :  { %221 = vlog2.f32 %v114_v57  ;;  %v25_v56 = vmul.f32 -0.5, %v307_v58 }
  0x1f   :  { %223 = vlog2.f32 %v22_v63 }
  0x20   :  { %v26_v11 = vadd.f32 1.0, %v25_v56 }
  0x21   :  { %v208_v7 = vpop.eup %207 }
  0x22   :  { %v210_v12 = vpop.eup %209  ;;  %v149_v16 = vsel %vm36_vm0, %v208_v7, 0.0 }
  0x23   :  { %v212_v17 = vpop.eup %211  ;;  %v150_v0 = vsel %vm36_vm0, %v210_v12, 0.0 }
  0x24   :  { %v214_v21 = vpop.eup %213  ;;  %v151_v22 = vadd.f32 %v150_v0, %v149_v16  ;;  %v158_v23 = vsel %vm36_vm0, %v212_v17, 0.0  ;;  %v27_v0 = vmul.f32 %v307_v58, %v26_v11 }
  0x25   :  { %v216_v24 = vpop.eup %215  ;;  %v159_v26 = vsel %vm36_vm0, %v214_v21, 0.0 }
  0x26   :  { %v218_v27 = vpop.eup %217  ;;  %v89_v28 = vmul.f32 0.6931472, %v216_v24  ;;  %v152_v30 = vrot.slane %v151_v22, 4  ;;  %v160_v31 = vadd.f32 %v159_v26, %v158_v23  ;;  %v17_v24 = vmin.f32 %v292_v4, 0.0 }
  0x27   :  { %v220_v32 = vpop.eup %219  ;;  %v98_v33 = vmul.f32 0.6931472, %v218_v27 }
  0x28   :  { %v222_v37 = vpop.eup %221  ;;  %v95_v38 = vsel %vm317_vm1, %v92_v1, %v89_v28  ;;  %v107_v39 = vmul.f32 0.6931472, %v220_v32  ;;  %v153_v40 = vadd.f32 %v152_v30, %v151_v22  ;;  %v161_v41 = vrot.slane %v160_v31, 4 }
  0x29   :  { %v104_v42 = vsel %vm321_vm2, %v101_v3, %v98_v33  ;;  %v116_v43 = vmul.f32 0.6931472, %v222_v37  ;;  %v123_v44 = vadd.f32 %v95_v38, %v67_v5  ;;  %v224_v60 = vpop.eup %223 }
  0x2a   :  { %v113_v45 = vsel %vm326_vm3, %v110_v29, %v107_v39  ;;  %v124_v46 = vadd.f32 %v104_v42, %v68_v8  ;;  %v154_v47 = vrot.slane %v153_v40, 2  ;;  %v162_v48 = vadd.f32 %v161_v41, %v160_v31 }
  0x2b   :  { %v122_v49 = vsel %vm330_vm4, %v119_v35, %v116_v43  ;;  %v125_v50 = vadd.f32 %v113_v45, %v69_v13  ;;  %v127_v51 = vmul.f32 %v208_v7, %v123_v44  ;;  %v24_v20 = vmul.f32 0.6931472, %v224_v60 }
  0x2c   :  { %v126_v52 = vadd.f32 %v122_v49, %v70_v14  ;;  %v128_v53 = vmul.f32 %v210_v12, %v124_v46  ;;  %v155_v54 = vadd.f32 %v154_v47, %v153_v40  ;;  %v163_v55 = vrot.slane %v162_v48, 2 }
  0x2d   :  { %v129_v57 = vmul.f32 %v212_v17, %v125_v50  ;;  %v131_v59 = vsel %vm36_vm0, %v127_v51, 0.0  ;;  %v28_v14 = vand.u32 2147483647, %v307_v58 }
  0x2e   :  { %v130_v61 = vmul.f32 %v214_v21, %v126_v52  ;;  %v132_v62 = vsel %vm36_vm0, %v128_v53, 0.0  ;;  %v156_v63 = vrot.slane %v155_v54, 1  ;;  %v164_v5 = vadd.f32 %v163_v55, %v162_v48 }
  0x2f   :  { %v133_v6 = vadd.f32 %v132_v62, %v131_v59  ;;  %v140_v8 = vsel %vm36_vm0, %v129_v57, 0.0  ;;  %vm29_vm5 = vcmp.lt.f32.partialorder %v28_v14, 0.0004427343 }
  0x30   :  { %v141_v7 = vsel %vm36_vm0, %v130_v61, 0.0  ;;  %v157_v9 = vadd.f32 %v156_v63, %v155_v54  ;;  %v165_v10 = vrot.slane %v164_v5, 1  ;;  %v30_v2 = vsel %vm29_vm5, %v27_v0, %v24_v20 }
  0x31   :  { %v134_v12 = vrot.slane %v133_v6, 4  ;;  %v142_v13 = vadd.f32 %v141_v7, %v140_v8  ;;  %v31_v28 = vsub.f32 %v17_v24, %v30_v2 }
  0x32   :  { %v166_v15 = vadd.f32 %v165_v10, %v164_v5  ;;  %v167_v16 = vmul.f32 16.0, %v157_v9 }
  0x33   :  { %v135_v17 = vadd.f32 %v134_v12, %v133_v6  ;;  %v143_v18 = vrot.slane %v142_v13, 4  ;;  %v173_v33 = vsub.f32 0.0, %v31_v28 }
  0x34   :  { %v168_v19 = vmul.f32 16.0, %v166_v15  ;;  %225 = vrcp.f32 %v167_v16 }
  0x35   :  { %v136_v21 = vrot.slane %v135_v17, 2  ;;  %v144_v1 = vadd.f32 %v143_v18, %v142_v13 }
  0x36   :  { %227 = vrcp.f32 %v168_v19 }
  0x37   :  { %v137_v22 = vadd.f32 %v136_v21, %v135_v17  ;;  %v145_v23 = vrot.slane %v144_v1, 2 }
  0x39   :  { %v138_v3 = vrot.slane %v137_v22, 1  ;;  %v146_v25 = vadd.f32 %v145_v23, %v144_v1 }
  0x3b   :  { %v139_v26 = vadd.f32 %v138_v3, %v137_v22  ;;  %v147_v27 = vrot.slane %v146_v25, 1 }
  0x3d   :  { %v148_v29 = vadd.f32 %v147_v27, %v146_v25 }
  0x3e   :  { %v226_v30 = vpop.eup %225 }
  0x3f   :  { %v171_v31 = vmul.f32 %v226_v30, %v139_v26 }
  0x40   :  { %v228_v32 = vpop.eup %227 }
  0x41   :  { %v172_v58 = vmul.f32 %v228_v32, %v148_v29 }
  0x43   :  { %v177_v34 = vsel %vm176_vm6, %v172_v58, %v171_v31 }
  0x44   :  { %v179_v35 = vadd.f32 %v177_v34, %v173_v33 }
  0x46   :  { %181 = vst.msk [vmem:[#allocation2] sm:$0x3] %vm180_vm7, %v179_v35 }
  0x47   :  { %240 = shalt.err (!%p237_p4)
}
  0x48   :  { %s241_s22 = scalar_lea.hbm %s364_s2, 32 }
  0x49   :  { %p242_p5 = scmp.ne.s32.totalorder %s364_s2, %s241_s22  ;;  %p245_p6 = scmp.lt.u32.totalorder %s241_s22, %s364_s2 }
  0x4b   :  { %p247_p7 = pnand %p245_p6, %p242_p5 }
  0x4d   :  { %250 = shalt.err (!%p247_p7)
}
  0x4e   :  { %191 = dma.vmem_to_hbm [thread:$0]  %s189_s1, 32, %s364_s2, [#allocation3]  }
  0x4f   :  { %251 = dma.done.wait [#allocation3], 32  }
  0x50   :  { %252 = vsyncadd [#allocation3], 4294967264 }
  0x51   :  { %195 = vsyncpa [#allocation3], 1 }

</bundles_post_ra>
